<compile_context>
chip_gen: v7x
topology: tpu7x:2x2x1
jax: 0.10.0
libtpu: 0.0.40
codegen_flags: <defaults>
</compile_context>

<pallas_src>
import math

import numpy as np
import jax
import jax.numpy as jnp
from jax import lax
from jax.experimental import pallas as pl
from jax.experimental.pallas import tpu as pltpu


_MASK_VALUE = -1e30          # stays in f32 only; never cast to bf16
# Scoped-VMEM budget safe on v5e/v6e (128 MiB physical) and v7x (64 MiB per TC).
_VMEM_LIMIT = 32 * 1024 * 1024


def _pick_tile(n, target):
    """Largest tile <= target that divides n and keeps the sublane dim legal
    (multiple of 8, or the full dimension)."""
    t = min(n, target)
    while t > 1:
        if n % t == 0 and (t % 8 == 0 or t == n):
            return t
        t -= 1
    return n  # fall back to the untiled (full) dimension


# ---------------------------------------------------------------------------
# Pass 1: fused QKV projection   (rows, C) @ (C, 3C) + b  ->  (rows, 3C) bf16
# ---------------------------------------------------------------------------
def _qkv_proj_kernel(x_ref, w_ref, b_ref, o_ref):
    acc = jnp.dot(x_ref[...], w_ref[...], preferred_element_type=jnp.float32)
    o_ref[...] = (acc + b_ref[...]).astype(o_ref.dtype)


# ---------------------------------------------------------------------------
# Pass 2: flash attention over a flattened lower-triangular (qi, ki) axis.
# Kernel args: 2 scalar-prefetch SMEM refs, then inputs, output, scratch.
# ---------------------------------------------------------------------------
def _flash_attn_kernel(qi_map, ki_map, q_ref, k_ref, v_ref, o_ref,
                       m_scr, l_scr, acc_scr):
    step = pl.program_id(2)
    qi = qi_map[step]
    ki = ki_map[step]
    tq, _ = q_ref.shape
    tk, _ = k_ref.shape

    # First kv tile of this q tile -> reset the online-softmax state.
    @pl.when(ki == 0)
    def _init():
        m_scr[...] = jnp.full(m_scr.shape, _MASK_VALUE, m_scr.dtype)
        l_scr[...] = jnp.zeros(l_scr.shape, l_scr.dtype)
        acc_scr[...] = jnp.zeros(acc_scr.shape, acc_scr.dtype)

    q = q_ref[...]                                   # (tq, D) bf16 (pre-scaled)
    k = k_ref[...]                                   # (tk, D) bf16
    # q @ k^T without materializing a transpose (contract on D), f32 accumulate.
    s = lax.dot_general(q, k, (((1,), (1,)), ((), ())),
                        preferred_element_type=jnp.float32)          # (tq, tk) f32

    # Causal mask in absolute offsets: global_col <= global_row.
    # For ki < qi (off-diagonal, already lower-triangular) it is all-true and the
    # select is free VALU filler; only the diagonal tile actually masks anything.
    row = lax.broadcasted_iota(jnp.int32, (tq, tk), 0)
    col = lax.broadcasted_iota(jnp.int32, (tq, tk), 1)
    causal = (col + ki * tk) <= (row + qi * tq)
    s = jnp.where(causal, s, jnp.float32(_MASK_VALUE))

    m_prev = m_scr[...]
    m_new = jnp.maximum(m_prev, jnp.max(s, axis=-1, keepdims=True))
    alpha = jnp.exp(m_prev - m_new)                  # f32
    p = jnp.exp(s - m_new)                           # f32 softmax numerator
    l_scr[...] = alpha * l_scr[...] + jnp.sum(p, axis=-1, keepdims=True)
    acc_scr[...] = alpha * acc_scr[...] + jnp.dot(
        p.astype(v_ref.dtype), v_ref[...], preferred_element_type=jnp.float32)
    m_scr[...] = m_new

    # Last kv tile of this q tile is the diagonal one (ki == qi) -> normalize & emit.
    @pl.when(ki == qi)
    def _finalize():
        inv_l = pl.reciprocal(l_scr[...], approx=True)   # EUP slot, effectively free
        o_ref[...] = (acc_scr[...] * inv_l).astype(o_ref.dtype)


# ---------------------------------------------------------------------------
# Pass 3: output projection, one grid step per (batch, row tile), all heads
# contracted inside the kernel (statically unrolled; H is a block dimension).
# ---------------------------------------------------------------------------
def _out_proj_kernel(y_ref, w_ref, b_ref, o_ref):
    n_head = y_ref.shape[0]
    acc = jnp.dot(y_ref[0], w_ref[0], preferred_element_type=jnp.float32)
    for h in range(1, n_head):
        acc = acc + jnp.dot(y_ref[h], w_ref[h], preferred_element_type=jnp.float32)
    o_ref[...] = (acc + b_ref[...]).astype(o_ref.dtype)


def causal_self_attention(x, w_qkv, b_qkv, w_proj, b_proj, n_head,
                          block_q=256, block_rows=1024, block_out_rows=512):
    """GPT-2 causal self-attention forward.

    x      : (B, T, C)
    w_qkv  : (3C, C)  PyTorch nn.Linear layout (out, in);  y = x @ W.T + b
    b_qkv  : (3C,)
    w_proj : (C, C)
    b_proj : (C,)
    block_q: attention q/kv tile. 256 fills the 2x256 MXU on v6e/v7x; use 128
             on v5e (4x128 MXU) if profiling shows spills.
    """
    B, T, C = x.shape
    H = n_head
    assert C % H == 0, "n_embd must be divisible by n_head"
    D = C // H
    out_dtype = x.dtype
    compute_dtype = jnp.bfloat16          # MXU operands; accumulation stays f32

    # ---------------- host-side weight prep (layout + scale folding) ----------
    scale = 1.0 / math.sqrt(D)
    w_qkv_t = jnp.asarray(w_qkv, jnp.float32).T                     # (C, 3C)
    b_qkv_f = jnp.asarray(b_qkv, jnp.float32)                       # (3C,)
    col_scale = jnp.concatenate([jnp.full((C,), scale, jnp.float32),
                                 jnp.ones((2 * C,), jnp.float32)])
    w_qkv_t = (w_qkv_t * col_scale[None, :]).astype(compute_dtype)  # scale folded into q
    b_qkv_f = (b_qkv_f * col_scale).reshape(1, 3 * C)               # f32
    w_proj_h = jnp.asarray(w_proj, jnp.float32).T.reshape(H, D, C).astype(compute_dtype)
    b_proj_f = jnp.asarray(b_proj, jnp.float32).reshape(1, C)

    # ---------------- pass 1: QKV projection (lane-dense 3C output) -----------
    # TODO(synk): for C >= ~2048 the resident (C, 3C) weight needs an N-axis grid
    # (and single-buffered weight blocks) to stay inside v7x's 64 MiB VMEM.
    rows = B * T
    tr = _pick_tile(rows, block_rows)
    x2d = x.reshape(rows, C).astype(compute_dtype)
    qkv = pl.pallas_call(
        _qkv_proj_kernel,
        out_shape=jax.ShapeDtypeStruct((rows, 3 * C), compute_dtype),
        grid_spec=pltpu.PrefetchScalarGridSpec(
            num_scalar_prefetch=0,
            grid=(rows // tr,),
            in_specs=[
                pl.BlockSpec((tr, C), lambda r: (r, 0)),
                pl.BlockSpec((C, 3 * C), lambda r: (0, 0)),   # weights stay resident
                pl.BlockSpec((1, 3 * C), lambda r: (0, 0)),
            ],
            out_specs=pl.BlockSpec((tr, 3 * C), lambda r: (r, 0)),
        ),
        compiler_params=pltpu.CompilerParams(
            dimension_semantics=("parallel",),
            vmem_limit_bytes=_VMEM_LIMIT),
    )(x2d, w_qkv_t, b_qkv_f)

    # Layout plumbing outside the kernels: (B, T, 3, H, D) -> (3, B, H, T, D).
    # TODO(synk): fold this relayout into pass 1 (grid over 3*H/g column groups)
    # if the transpose fusion shows up as its own HBM round trip in the profile.
    qkv = qkv.reshape(B, T, 3, H, D).transpose(2, 0, 3, 1, 4)
    q, k, v = qkv[0], qkv[1], qkv[2]                       # each (B, H, T, D), bf16

    # ---------------- pass 2: flash attention (triangle-only grid) ------------
    tq = _pick_tile(T, block_q)
    tk = tq                                # mask/finalize logic assumes tq == tk
    nq = T // tq
    # Flatten the lower-triangular (qi, ki) pairs into one grid axis so no grid
    # step is ever a fully-masked no-op (saves ~0.35 us of fixed overhead each).
    qi_host, ki_host = [], []
    for qi_ in range(nq):
        for ki_ in range(qi_ + 1):
            qi_host.append(qi_)
            ki_host.append(ki_)
    n_steps = len(qi_host)                                 # nq*(nq+1)/2
    qi_of_step = jnp.asarray(np.asarray(qi_host, dtype=np.int32))
    ki_of_step = jnp.asarray(np.asarray(ki_host, dtype=np.int32))

    y_att = pl.pallas_call(
        _flash_attn_kernel,
        out_shape=jax.ShapeDtypeStruct((B, H, T, D), compute_dtype),
        grid_spec=pltpu.PrefetchScalarGridSpec(
            num_scalar_prefetch=2,
            grid=(B, H, n_steps),
            in_specs=[
                pl.BlockSpec((None, None, tq, D),
                             lambda b, h, s, qi_m, ki_m: (b, h, qi_m[s], 0)),
                pl.BlockSpec((None, None, tk, D),
                             lambda b, h, s, qi_m, ki_m: (b, h, ki_m[s], 0)),
                pl.BlockSpec((None, None, tk, D),
                             lambda b, h, s, qi_m, ki_m: (b, h, ki_m[s], 0)),
            ],
            out_specs=pl.BlockSpec((None, None, tq, D),
                                   lambda b, h, s, qi_m, ki_m: (b, h, qi_m[s], 0)),
            scratch_shapes=[
                pltpu.VMEM((tq, 1), jnp.float32),   # running max (f32)
                pltpu.VMEM((tq, 1), jnp.float32),   # running denominator (f32)
                pltpu.VMEM((tq, D), jnp.float32),   # running weighted sum (f32)
            ],
        ),
        compiler_params=pltpu.CompilerParams(
            # B, H stay the parallel prefix (megacore sharding on v7x); the
            # flattened triangle axis is the sequential reduction axis.
            dimension_semantics=("parallel", "parallel", "arbitrary"),
            vmem_limit_bytes=_VMEM_LIMIT),
    )(qi_of_step, ki_of_step, q, k, v)

    # ---------------- pass 3: output projection (heads contracted in-kernel) --
    tq3 = _pick_tile(T, block_out_rows)
    out = pl.pallas_call(
        _out_proj_kernel,
        out_shape=jax.ShapeDtypeStruct((B, T, C), out_dtype),
        grid_spec=pltpu.PrefetchScalarGridSpec(
            num_scalar_prefetch=0,
            grid=(B, T // tq3),
            in_specs=[
                pl.BlockSpec((None, H, tq3, D), lambda b, r: (b, 0, r, 0)),
                pl.BlockSpec((H, D, C), lambda b, r: (0, 0, 0)),   # resident
                pl.BlockSpec((1, C), lambda b, r: (0, 0)),
            ],
            out_specs=pl.BlockSpec((None, tq3, C), lambda b, r: (b, r, 0)),
        ),
        compiler_params=pltpu.CompilerParams(
            dimension_semantics=("parallel", "parallel"),
            vmem_limit_bytes=_VMEM_LIMIT),
    )(y_att, w_proj_h, b_proj_f)

    return out


def _reference(x, w_qkv, b_qkv, w_proj, b_proj, n_head):
    """Pure f32 JAX mirror of the PyTorch module (nn.Linear layout weights)."""
    B, T, C = x.shape
    D = C // n_head
    qkv = x @ w_qkv.T + b_qkv
    q, k, v = jnp.split(qkv, 3, axis=-1)
    q = q.reshape(B, T, n_head, D).transpose(0, 2, 1, 3)
    k = k.reshape(B, T, n_head, D).transpose(0, 2, 1, 3)
    v = v.reshape(B, T, n_head, D).transpose(0, 2, 1, 3)
    s = jnp.einsum('bhtd,bhsd->bhts', q, k) / math.sqrt(D)
    mask = jnp.tril(jnp.ones((T, T), bool))
    s = jnp.where(mask[None, None], s, -jnp.inf)
    p = jax.nn.softmax(s, axis=-1)
    y = jnp.einsum('bhts,bhsd->bhtd', p, v).transpose(0, 2, 1, 3).reshape(B, T, C)
    return y @ w_proj.T + b_proj


if __name__ == "__main__":
    # Small config consistent with the module: n_embd divisible by n_head.
    B, T, C, H = 2, 8, 32, 4

    key = jax.random.PRNGKey(0)
    kx, k1, k2, k3, k4 = jax.random.split(key, 5)

    x = jax.random.normal(kx, (B, T, C), dtype=jnp.float32)

    # Parameters in PyTorch nn.Linear layout: weight (out, in), bias (out,).
    w_qkv = jax.random.normal(k1, (3 * C, C), dtype=jnp.float32) * 0.02
    b_qkv = jax.random.normal(k2, (3 * C,), dtype=jnp.float32) * 0.02
    w_proj = jax.random.normal(k3, (C, C), dtype=jnp.float32) * 0.02
    b_proj = jax.random.normal(k4, (C,), dtype=jnp.float32) * 0.02

    attn = jax.jit(causal_self_attention, static_argnames=("n_head",))
    y = attn(x, w_qkv, b_qkv, w_proj, b_proj, n_head=H)
    jax.block_until_ready(y)

    y_ref = _reference(x, w_qkv, b_qkv, w_proj, b_proj, n_head=H)
    # bf16 MXU operands + approx reciprocal => bf16-appropriate tolerance.
    assert jnp.allclose(y, y_ref, atol=2e-2, rtol=2e-2), (
        f"mismatch vs reference: max abs err {jnp.max(jnp.abs(y - y_ref))}")

    print("KERNEL_OK")
</pallas_src>

<mosaic_0001>
module attributes {stable_mosaic.version = 11 : i64} {
  func.func @_qkv_proj_kernel(%arg0: i32, %arg1: memref<16x32xbf16, #tpu.memory_space<vmem>>, %arg2: memref<32x96xbf16, #tpu.memory_space<vmem>>, %arg3: memref<1x96xf32, #tpu.memory_space<vmem>>, %arg4: memref<16x96xbf16, #tpu.memory_space<vmem>>) attributes {dimension_semantics = [#tpu.dimension_semantics<parallel>], iteration_bounds = array<i64: 1>, scalar_prefetch = 0 : i64, scratch_operands = 0 : i64, tpu.core_type = #tpu.core_type<tc>, window_params = [{transform_indices = @transform_0, window_bounds = array<i64: 16, 32>}, {pipeline_mode = #tpu.pipeline_mode<synchronous>, transform_indices = @transform_1, window_bounds = array<i64: 32, 96>}, {pipeline_mode = #tpu.pipeline_mode<synchronous>, transform_indices = @transform_2, window_bounds = array<i64: 1, 96>}, {transform_indices = @transform_3, window_bounds = array<i64: 16, 96>}]} {
    %c0 = arith.constant 0 : index
    %c0_0 = arith.constant 0 : index
    %0 = vector.load %arg1[%c0, %c0_0] : memref<16x32xbf16, #tpu.memory_space<vmem>>, vector<16x32xbf16>
    %c0_1 = arith.constant 0 : index
    %c0_2 = arith.constant 0 : index
    %1 = vector.load %arg2[%c0_1, %c0_2] : memref<32x96xbf16, #tpu.memory_space<vmem>>, vector<32x96xbf16>
    %cst = arith.constant dense<0.000000e+00> : vector<16x96xf32>
    %2 = tpu.matmul %0, %1, %cst {dimension_numbers = #tpu.dot_dimension_numbers<[1], [0], [0], [1], [0, 0, 1, 1], [], []>} : vector<16x32xbf16>, vector<32x96xbf16>, vector<16x96xf32> -> vector<16x96xf32>
    %c0_3 = arith.constant 0 : index
    %c0_4 = arith.constant 0 : index
    %3 = vector.load %arg3[%c0_3, %c0_4] : memref<1x96xf32, #tpu.memory_space<vmem>>, vector<1x96xf32>
    %4 = vector.broadcast %3 : vector<1x96xf32> to vector<16x96xf32>
    %5 = arith.addf %2, %4 : vector<16x96xf32>
    %6 = arith.truncf %5 : vector<16x96xf32> to vector<16x96xbf16>
    %c0_5 = arith.constant 0 : index
    %c0_6 = arith.constant 0 : index
    %7 = vector.load %arg4[%c0_5, %c0_6] : memref<16x96xbf16, #tpu.memory_space<vmem>>, vector<16x96xbf16>
    tpu.vector_store %arg4[%c0_5, %c0_6], %6 {strides = array<i32>} : memref<16x96xbf16, #tpu.memory_space<vmem>>, vector<16x96xbf16>,
    return
  }
  func.func @transform_0(%arg0: i32) -> (i32, i32) {
    %c0_i32 = arith.constant 0 : i32
    %c0_i32_0 = arith.constant 0 : i32
    return %arg0, %c0_i32 : i32, i32
  }
  func.func @transform_1(%arg0: i32) -> (i32, i32) {
    %c0_i32 = arith.constant 0 : i32
    %c0_i32_0 = arith.constant 0 : i32
    %c0_i32_1 = arith.constant 0 : i32
    return %c0_i32, %c0_i32_0 : i32, i32
  }
  func.func @transform_2(%arg0: i32) -> (i32, i32) {
    %c0_i32 = arith.constant 0 : i32
    %c0_i32_0 = arith.constant 0 : i32
    %c0_i32_1 = arith.constant 0 : i32
    return %c0_i32, %c0_i32_0 : i32, i32
  }
  func.func @transform_3(%arg0: i32) -> (i32, i32) {
    %c0_i32 = arith.constant 0 : i32
    %c0_i32_0 = arith.constant 0 : i32
    return %arg0, %c0_i32 : i32, i32
  }
}

module attributes {stable_mosaic.version = 11 : i64} {
  func.func @_flash_attn_kernel(%arg0: i32, %arg1: i32, %arg2: i32, %arg3: memref<1xi32, #tpu.memory_space<smem>>, %arg4: memref<1xi32, #tpu.memory_space<smem>>, %arg5: memref<1x1x8x8xbf16, #tpu.memory_space<vmem>>, %arg6: memref<1x1x8x8xbf16, #tpu.memory_space<vmem>>, %arg7: memref<1x1x8x8xbf16, #tpu.memory_space<vmem>>, %arg8: memref<1x1x8x8xbf16, #tpu.memory_space<vmem>>, %arg9: memref<8x1xf32, #tpu.memory_space<vmem>>, %arg10: memref<8x1xf32, #tpu.memory_space<vmem>>, %arg11: memref<8x8xf32, #tpu.memory_space<vmem>>) attributes {dimension_semantics = [#tpu.dimension_semantics<parallel>, #tpu.dimension_semantics<parallel>, #tpu.dimension_semantics<arbitrary>], iteration_bounds = array<i64: 2, 4, 1>, scalar_prefetch = 2 : i64, scratch_operands = 3 : i64, tpu.core_type = #tpu.core_type<tc>, window_params = [{transform_indices = @transform_0, window_bounds = array<i64: 1, 1, 8, 8>}, {transform_indices = @transform_1, window_bounds = array<i64: 1, 1, 8, 8>}, {transform_indices = @transform_2, window_bounds = array<i64: 1, 1, 8, 8>}, {transform_indices = @transform_3, window_bounds = array<i64: 1, 1, 8, 8>}]} {
    %0 = arith.index_cast %arg2 : i32 to index
    %1 = memref.load %arg3[%0] : memref<1xi32, #tpu.memory_space<smem>>
    %2 = arith.index_cast %arg2 : i32 to index
    %3 = memref.load %arg4[%2] : memref<1xi32, #tpu.memory_space<smem>>
    %c0_i32 = arith.constant 0 : i32
    %4 = arith.cmpi eq, %3, %c0_i32 : i32
    %5 = arith.extui %4 : i1 to i32
    %c0_i32_0 = arith.constant 0 : i32
    %6 = arith.cmpi ne, %5, %c0_i32_0 : i32
    scf.if %6 {
      %cst_30 = arith.constant -1.000000e+30 : f32
      %51 = vector.broadcast %cst_30 : f32 to vector<8x1xf32>
      %c0_31 = arith.constant 0 : index
      %c0_32 = arith.constant 0 : index
      %52 = vector.load %arg9[%c0_31, %c0_32] : memref<8x1xf32, #tpu.memory_space<vmem>>, vector<8x1xf32>
      tpu.vector_store %arg9[%c0_31, %c0_32], %51 {strides = array<i32>} : memref<8x1xf32, #tpu.memory_space<vmem>>, vector<8x1xf32>,
      %cst_33 = arith.constant 0.000000e+00 : f32
      %53 = vector.broadcast %cst_33 : f32 to vector<8x1xf32>
      %c0_34 = arith.constant 0 : index
      %c0_35 = arith.constant 0 : index
      %54 = vector.load %arg10[%c0_34, %c0_35] : memref<8x1xf32, #tpu.memory_space<vmem>>, vector<8x1xf32>
      tpu.vector_store %arg10[%c0_34, %c0_35], %53 {strides = array<i32>} : memref<8x1xf32, #tpu.memory_space<vmem>>, vector<8x1xf32>,
      %cst_36 = arith.constant 0.000000e+00 : f32
      %55 = vector.broadcast %cst_36 : f32 to vector<8x8xf32>
      %c0_37 = arith.constant 0 : index
      %c0_38 = arith.constant 0 : index
      %56 = vector.load %arg11[%c0_37, %c0_38] : memref<8x8xf32, #tpu.memory_space<vmem>>, vector<8x8xf32>
      tpu.vector_store %arg11[%c0_37, %c0_38], %55 {strides = array<i32>} : memref<8x8xf32, #tpu.memory_space<vmem>>, vector<8x8xf32>,
    } else {
    }
    %c0 = arith.constant 0 : index
    %c0_1 = arith.constant 0 : index
    %c0_2 = arith.constant 0 : index
    %c0_3 = arith.constant 0 : index
    %7 = vector.load %arg5[%c0, %c0_1, %c0_2, %c0_3] : memref<1x1x8x8xbf16, #tpu.memory_space<vmem>>, vector<1x1x8x8xbf16>
    %8 = vector.shape_cast %7 : vector<1x1x8x8xbf16> to vector<8x8xbf16>
    %c0_4 = arith.constant 0 : index
    %c0_5 = arith.constant 0 : index
    %c0_6 = arith.constant 0 : index
    %c0_7 = arith.constant 0 : index
    %9 = vector.load %arg6[%c0_4, %c0_5, %c0_6, %c0_7] : memref<1x1x8x8xbf16, #tpu.memory_space<vmem>>, vector<1x1x8x8xbf16>
    %10 = vector.shape_cast %9 : vector<1x1x8x8xbf16> to vector<8x8xbf16>
    %cst = arith.constant dense<0.000000e+00> : vector<8x8xf32>
    %11 = tpu.matmul %8, %10, %cst {dimension_numbers = #tpu.dot_dimension_numbers<[1], [1], [0], [0], [0, 0, 1, 0], [], []>} : vector<8x8xbf16>, vector<8x8xbf16>, vector<8x8xf32> -> vector<8x8xf32>
    %12 = tpu.iota {dimensions = array<i32: 0>} : vector<8x8xi32>
    %13 = tpu.iota {dimensions = array<i32: 1>} : vector<8x8xi32>
    %c8_i32 = arith.constant 8 : i32
    %14 = arith.muli %3, %c8_i32 : i32
    %15 = vector.broadcast %14 : i32 to vector<8x8xi32>
    %16 = arith.addi %13, %15 : vector<8x8xi32>
    %c8_i32_8 = arith.constant 8 : i32
    %17 = arith.muli %1, %c8_i32_8 : i32
    %18 = vector.broadcast %17 : i32 to vector<8x8xi32>
    %19 = arith.addi %12, %18 : vector<8x8xi32>
    %20 = arith.cmpi sle, %16, %19 : vector<8x8xi32>
    %cst_9 = arith.constant -1.000000e+30 : f32
    %21 = vector.broadcast %cst_9 : f32 to vector<8x8xf32>
    %22 = arith.select %20, %11, %21 : vector<8x8xi1>, vector<8x8xf32>
    %c0_10 = arith.constant 0 : index
    %c0_11 = arith.constant 0 : index
    %23 = vector.load %arg9[%c0_10, %c0_11] : memref<8x1xf32, #tpu.memory_space<vmem>>, vector<8x1xf32>
    %cst_12 = arith.constant dense<0xFF800000> : vector<8xf32>
    %24 = vector.multi_reduction <maximumf>, %22, %cst_12 [1] : vector<8x8xf32> to vector<8xf32>
    %25 = vector.shape_cast %24 : vector<8xf32> to vector<8x1xf32>
    %26 = arith.maximumf %23, %25 : vector<8x1xf32>
    %27 = arith.subf %23, %26 : vector<8x1xf32>
    %28 = math.exp %27 : vector<8x1xf32>
    %29 = vector.broadcast %26 : vector<8x1xf32> to vector<8x8xf32>
    %30 = arith.subf %22, %29 : vector<8x8xf32>
    %31 = math.exp %30 : vector<8x8xf32>
    %c0_13 = arith.constant 0 : index
    %c0_14 = arith.constant 0 : index
    %32 = vector.load %arg10[%c0_13, %c0_14] : memref<8x1xf32, #tpu.memory_space<vmem>>, vector<8x1xf32>
    %33 = arith.mulf %28, %32 : vector<8x1xf32>
    %cst_15 = arith.constant dense<0.000000e+00> : vector<8xf32>
    %34 = vector.multi_reduction <add>, %31, %cst_15 [1] : vector<8x8xf32> to vector<8xf32>
    %35 = vector.shape_cast %34 : vector<8xf32> to vector<8x1xf32>
    %36 = arith.addf %33, %35 : vector<8x1xf32>
    %c0_16 = arith.constant 0 : index
    %c0_17 = arith.constant 0 : index
    %37 = vector.load %arg10[%c0_16, %c0_17] : memref<8x1xf32, #tpu.memory_space<vmem>>, vector<8x1xf32>
    tpu.vector_store %arg10[%c0_16, %c0_17], %36 {strides = array<i32>} : memref<8x1xf32, #tpu.memory_space<vmem>>, vector<8x1xf32>,
    %c0_18 = arith.constant 0 : index
    %c0_19 = arith.constant 0 : index
    %38 = vector.load %arg11[%c0_18, %c0_19] : memref<8x8xf32, #tpu.memory_space<vmem>>, vector<8x8xf32>
    %39 = vector.broadcast %28 : vector<8x1xf32> to vector<8x8xf32>
    %40 = arith.mulf %39, %38 : vector<8x8xf32>
    %41 = arith.truncf %31 : vector<8x8xf32> to vector<8x8xbf16>
    %c0_20 = arith.constant 0 : index
    %c0_21 = arith.constant 0 : index
    %c0_22 = arith.constant 0 : index
    %c0_23 = arith.constant 0 : index
    %42 = vector.load %arg7[%c0_20, %c0_21, %c0_22, %c0_23] : memref<1x1x8x8xbf16, #tpu.memory_space<vmem>>, vector<1x1x8x8xbf16>
    %43 = vector.shape_cast %42 : vector<1x1x8x8xbf16> to vector<8x8xbf16>
    %cst_24 = arith.constant dense<0.000000e+00> : vector<8x8xf32>
    %44 = tpu.matmul %41, %43, %cst_24 {dimension_numbers = #tpu.dot_dimension_numbers<[1], [0], [0], [1], [0, 0, 1, 1], [], []>} : vector<8x8xbf16>, vector<8x8xbf16>, vector<8x8xf32> -> vector<8x8xf32>
    %45 = arith.addf %40, %44 : vector<8x8xf32>
    %c0_25 = arith.constant 0 : index
    %c0_26 = arith.constant 0 : index
    %46 = vector.load %arg11[%c0_25, %c0_26] : memref<8x8xf32, #tpu.memory_space<vmem>>, vector<8x8xf32>
    tpu.vector_store %arg11[%c0_25, %c0_26], %45 {strides = array<i32>} : memref<8x8xf32, #tpu.memory_space<vmem>>, vector<8x8xf32>,
    %c0_27 = arith.constant 0 : index
    %c0_28 = arith.constant 0 : index
    %47 = vector.load %arg9[%c0_27, %c0_28] : memref<8x1xf32, #tpu.memory_space<vmem>>, vector<8x1xf32>
    tpu.vector_store %arg9[%c0_27, %c0_28], %26 {strides = array<i32>} : memref<8x1xf32, #tpu.memory_space<vmem>>, vector<8x1xf32>,
    %48 = arith.cmpi eq, %3, %1 : i32
    %49 = arith.extui %48 : i1 to i32
    %c0_i32_29 = arith.constant 0 : i32
    %50 = arith.cmpi ne, %49, %c0_i32_29 : i32
    scf.if %50 {
      %c0_30 = arith.constant 0 : index
      %c0_31 = arith.constant 0 : index
      %51 = vector.load %arg10[%c0_30, %c0_31] : memref<8x1xf32, #tpu.memory_space<vmem>>, vector<8x1xf32>
      %52 = tpu.reciprocal %51 {approx = true} : vector<8x1xf32> -> vector<8x1xf32>
      %c0_32 = arith.constant 0 : index
      %c0_33 = arith.constant 0 : index
      %53 = vector.load %arg11[%c0_32, %c0_33] : memref<8x8xf32, #tpu.memory_space<vmem>>, vector<8x8xf32>
      %54 = vector.broadcast %52 : vector<8x1xf32> to vector<8x8xf32>
      %55 = arith.mulf %53, %54 : vector<8x8xf32>
      %56 = arith.truncf %55 : vector<8x8xf32> to vector<8x8xbf16>
      %c0_34 = arith.constant 0 : index
      %c0_35 = arith.constant 0 : index
      %c0_36 = arith.constant 0 : index
      %c0_37 = arith.constant 0 : index
      %57 = vector.load %arg8[%c0_34, %c0_35, %c0_36, %c0_37] : memref<1x1x8x8xbf16, #tpu.memory_space<vmem>>, vector<1x1x8x8xbf16>
      %58 = vector.shape_cast %57 : vector<1x1x8x8xbf16> to vector<8x8xbf16>
      %59 = vector.shape_cast %56 : vector<8x8xbf16> to vector<1x1x8x8xbf16>
      tpu.vector_store %arg8[%c0_34, %c0_35, %c0_36, %c0_37], %59 {strides = array<i32>} : memref<1x1x8x8xbf16, #tpu.memory_space<vmem>>, vector<1x1x8x8xbf16>,
    } else {
    }
    return
  }
  func.func @transform_0(%arg0: i32, %arg1: i32, %arg2: i32, %arg3: memref<1xi32, #tpu.memory_space<smem>>, %arg4: memref<1xi32, #tpu.memory_space<smem>>) -> (i32, i32, i32, i32) {
    %0 = arith.index_cast %arg2 : i32 to index
    %1 = memref.load %arg3[%0] : memref<1xi32, #tpu.memory_space<smem>>
    %c0_i32 = arith.constant 0 : i32
    %c0_i32_0 = arith.constant 0 : i32
    return %arg0, %arg1, %1, %c0_i32 : i32, i32, i32, i32
  }
  func.func @transform_1(%arg0: i32, %arg1: i32, %arg2: i32, %arg3: memref<1xi32, #tpu.memory_space<smem>>, %arg4: memref<1xi32, #tpu.memory_space<smem>>) -> (i32, i32, i32, i32) {
    %0 = arith.index_cast %arg2 : i32 to index
    %1 = memref.load %arg4[%0] : memref<1xi32, #tpu.memory_space<smem>>
    %c0_i32 = arith.constant 0 : i32
    %c0_i32_0 = arith.constant 0 : i32
    return %arg0, %arg1, %1, %c0_i32 : i32, i32, i32, i32
  }
  func.func @transform_2(%arg0: i32, %arg1: i32, %arg2: i32, %arg3: memref<1xi32, #tpu.memory_space<smem>>, %arg4: memref<1xi32, #tpu.memory_space<smem>>) -> (i32, i32, i32, i32) {
    %0 = arith.index_cast %arg2 : i32 to index
    %1 = memref.load %arg4[%0] : memref<1xi32, #tpu.memory_space<smem>>
    %c0_i32 = arith.constant 0 : i32
    %c0_i32_0 = arith.constant 0 : i32
    return %arg0, %arg1, %1, %c0_i32 : i32, i32, i32, i32
  }
  func.func @transform_3(%arg0: i32, %arg1: i32, %arg2: i32, %arg3: memref<1xi32, #tpu.memory_space<smem>>, %arg4: memref<1xi32, #tpu.memory_space<smem>>) -> (i32, i32, i32, i32) {
    %0 = arith.index_cast %arg2 : i32 to index
    %1 = memref.load %arg3[%0] : memref<1xi32, #tpu.memory_space<smem>>
    %c0_i32 = arith.constant 0 : i32
    %c0_i32_0 = arith.constant 0 : i32
    return %arg0, %arg1, %1, %c0_i32 : i32, i32, i32, i32
  }
}

module attributes {stable_mosaic.version = 11 : i64} {
  func.func @_out_proj_kernel(%arg0: i32, %arg1: i32, %arg2: memref<1x4x8x8xbf16, #tpu.memory_space<vmem>>, %arg3: memref<4x8x32xbf16, #tpu.memory_space<vmem>>, %arg4: memref<1x32xf32, #tpu.memory_space<vmem>>, %arg5: memref<1x8x32xf32, #tpu.memory_space<vmem>>) attributes {dimension_semantics = [#tpu.dimension_semantics<parallel>, #tpu.dimension_semantics<parallel>], iteration_bounds = array<i64: 2, 1>, scalar_prefetch = 0 : i64, scratch_operands = 0 : i64, tpu.core_type = #tpu.core_type<tc>, window_params = [{transform_indices = @transform_0, window_bounds = array<i64: 1, 4, 8, 8>}, {pipeline_mode = #tpu.pipeline_mode<synchronous>, transform_indices = @transform_1, window_bounds = array<i64: 4, 8, 32>}, {pipeline_mode = #tpu.pipeline_mode<synchronous>, transform_indices = @transform_2, window_bounds = array<i64: 1, 32>}, {transform_indices = @transform_3, window_bounds = array<i64: 1, 8, 32>}]} {
    %c0 = arith.constant 0 : index
    %c0_0 = arith.constant 0 : index
    %c0_1 = arith.constant 0 : index
    %c0_2 = arith.constant 0 : index
    %0 = vector.load %arg2[%c0, %c0_0, %c0_1, %c0_2] : memref<1x4x8x8xbf16, #tpu.memory_space<vmem>>, vector<1x1x8x8xbf16>
    %1 = vector.shape_cast %0 : vector<1x1x8x8xbf16> to vector<8x8xbf16>
    %c0_3 = arith.constant 0 : index
    %c0_4 = arith.constant 0 : index
    %c0_5 = arith.constant 0 : index
    %2 = vector.load %arg3[%c0_3, %c0_4, %c0_5] : memref<4x8x32xbf16, #tpu.memory_space<vmem>>, vector<1x8x32xbf16>
    %3 = vector.shape_cast %2 : vector<1x8x32xbf16> to vector<8x32xbf16>
    %cst = arith.constant dense<0.000000e+00> : vector<8x32xf32>
    %4 = tpu.matmul %1, %3, %cst {dimension_numbers = #tpu.dot_dimension_numbers<[1], [0], [0], [1], [0, 0, 1, 1], [], []>} : vector<8x8xbf16>, vector<8x32xbf16>, vector<8x32xf32> -> vector<8x32xf32>
    %c0_6 = arith.constant 0 : index
    %c1 = arith.constant 1 : index
    %c0_7 = arith.constant 0 : index
    %c0_8 = arith.constant 0 : index
    %5 = vector.load %arg2[%c0_6, %c1, %c0_7, %c0_8] : memref<1x4x8x8xbf16, #tpu.memory_space<vmem>>, vector<1x1x8x8xbf16>
    %6 = vector.shape_cast %5 : vector<1x1x8x8xbf16> to vector<8x8xbf16>
    %c1_9 = arith.constant 1 : index
    %c0_10 = arith.constant 0 : index
    %c0_11 = arith.constant 0 : index
    %7 = vector.load %arg3[%c1_9, %c0_10, %c0_11] : memref<4x8x32xbf16, #tpu.memory_space<vmem>>, vector<1x8x32xbf16>
    %8 = vector.shape_cast %7 : vector<1x8x32xbf16> to vector<8x32xbf16>
    %cst_12 = arith.constant dense<0.000000e+00> : vector<8x32xf32>
    %9 = tpu.matmul %6, %8, %cst_12 {dimension_numbers = #tpu.dot_dimension_numbers<[1], [0], [0], [1], [0, 0, 1, 1], [], []>} : vector<8x8xbf16>, vector<8x32xbf16>, vector<8x32xf32> -> vector<8x32xf32>
    %10 = arith.addf %4, %9 : vector<8x32xf32>
    %c0_13 = arith.constant 0 : index
    %c2 = arith.constant 2 : index
    %c0_14 = arith.constant 0 : index
    %c0_15 = arith.constant 0 : index
    %11 = vector.load %arg2[%c0_13, %c2, %c0_14, %c0_15] : memref<1x4x8x8xbf16, #tpu.memory_space<vmem>>, vector<1x1x8x8xbf16>
    %12 = vector.shape_cast %11 : vector<1x1x8x8xbf16> to vector<8x8xbf16>
    %c2_16 = arith.constant 2 : index
    %c0_17 = arith.constant 0 : index
    %c0_18 = arith.constant 0 : index
    %13 = vector.load %arg3[%c2_16, %c0_17, %c0_18] : memref<4x8x32xbf16, #tpu.memory_space<vmem>>, vector<1x8x32xbf16>
    %14 = vector.shape_cast %13 : vector<1x8x32xbf16> to vector<8x32xbf16>
    %cst_19 = arith.constant dense<0.000000e+00> : vector<8x32xf32>
    %15 = tpu.matmul %12, %14, %cst_19 {dimension_numbers = #tpu.dot_dimension_numbers<[1], [0], [0], [1], [0, 0, 1, 1], [], []>} : vector<8x8xbf16>, vector<8x32xbf16>, vector<8x32xf32> -> vector<8x32xf32>
    %16 = arith.addf %10, %15 : vector<8x32xf32>
    %c0_20 = arith.constant 0 : index
    %c3 = arith.constant 3 : index
    %c0_21 = arith.constant 0 : index
    %c0_22 = arith.constant 0 : index
    %17 = vector.load %arg2[%c0_20, %c3, %c0_21, %c0_22] : memref<1x4x8x8xbf16, #tpu.memory_space<vmem>>, vector<1x1x8x8xbf16>
    %18 = vector.shape_cast %17 : vector<1x1x8x8xbf16> to vector<8x8xbf16>
    %c3_23 = arith.constant 3 : index
    %c0_24 = arith.constant 0 : index
    %c0_25 = arith.constant 0 : index
    %19 = vector.load %arg3[%c3_23, %c0_24, %c0_25] : memref<4x8x32xbf16, #tpu.memory_space<vmem>>, vector<1x8x32xbf16>
    %20 = vector.shape_cast %19 : vector<1x8x32xbf16> to vector<8x32xbf16>
    %cst_26 = arith.constant dense<0.000000e+00> : vector<8x32xf32>
    %21 = tpu.matmul %18, %20, %cst_26 {dimension_numbers = #tpu.dot_dimension_numbers<[1], [0], [0], [1], [0, 0, 1, 1], [], []>} : vector<8x8xbf16>, vector<8x32xbf16>, vector<8x32xf32> -> vector<8x32xf32>
    %22 = arith.addf %16, %21 : vector<8x32xf32>
    %c0_27 = arith.constant 0 : index
    %c0_28 = arith.constant 0 : index
    %23 = vector.load %arg4[%c0_27, %c0_28] : memref<1x32xf32, #tpu.memory_space<vmem>>, vector<1x32xf32>
    %24 = vector.broadcast %23 : vector<1x32xf32> to vector<8x32xf32>
    %25 = arith.addf %22, %24 : vector<8x32xf32>
    %c0_29 = arith.constant 0 : index
    %c0_30 = arith.constant 0 : index
    %c0_31 = arith.constant 0 : index
    %26 = vector.load %arg5[%c0_29, %c0_30, %c0_31] : memref<1x8x32xf32, #tpu.memory_space<vmem>>, vector<1x8x32xf32>
    %27 = vector.shape_cast %26 : vector<1x8x32xf32> to vector<8x32xf32>
    %28 = vector.shape_cast %25 : vector<8x32xf32> to vector<1x8x32xf32>
    tpu.vector_store %arg5[%c0_29, %c0_30, %c0_31], %28 {strides = array<i32>} : memref<1x8x32xf32, #tpu.memory_space<vmem>>, vector<1x8x32xf32>,
    return
  }
  func.func @transform_0(%arg0: i32, %arg1: i32) -> (i32, i32, i32, i32) {
    %c0_i32 = arith.constant 0 : i32
    %c0_i32_0 = arith.constant 0 : i32
    %c0_i32_1 = arith.constant 0 : i32
    return %arg0, %c0_i32, %arg1, %c0_i32_0 : i32, i32, i32, i32
  }
  func.func @transform_1(%arg0: i32, %arg1: i32) -> (i32, i32, i32) {
    %c0_i32 = arith.constant 0 : i32
    %c0_i32_0 = arith.constant 0 : i32
    %c0_i32_1 = arith.constant 0 : i32
    %c0_i32_2 = arith.constant 0 : i32
    return %c0_i32, %c0_i32_0, %c0_i32_1 : i32, i32, i32
  }
  func.func @transform_2(%arg0: i32, %arg1: i32) -> (i32, i32) {
    %c0_i32 = arith.constant 0 : i32
    %c0_i32_0 = arith.constant 0 : i32
    %c0_i32_1 = arith.constant 0 : i32
    return %c0_i32, %c0_i32_0 : i32, i32
  }
  func.func @transform_3(%arg0: i32, %arg1: i32) -> (i32, i32, i32) {
    %c0_i32 = arith.constant 0 : i32
    %c0_i32_0 = arith.constant 0 : i32
    return %arg0, %arg1, %c0_i32 : i32, i32, i32
  }
}

</mosaic_0001>

<bundles_post_ra>
// kernel: causal_self_attention.3
= control target key start
LH: loop header
LB: loop body
LE: loop exit
PB: predicated region body
PF: predicated region fallthrough
CT: control target
= control target key end

     0   :  { %v130_v0 = vmov 0.0   ;;  %vm131_vm0 = vmmov 0   ;;  %vm45_vm1 = vcmask 261120   ;;  %vm98_vm2 = vcmask 781312   ;;  %s170_s1 = inlined_call_operand.vmem [shape: bf16[32,96], index: 1, kind: input, shape index: {}]   ;;  %s171_s0 = inlined_call_operand.vmem [shape: bf16[16,32], index: 0, kind: input, shape index: {}]   ;;  %s172_s2 = inlined_call_operand.vmem [shape: f32[1,96], index: 2, kind: input, shape index: {}]   ;;  %s173_s3 = inlined_call_operand.vmem [shape: bf16[16,96], index: 3, kind: output, shape index: {}]  }
   0x1   :  { %117 = vmatprep.subr.bf16.mxu0 %v130_v0  ;;  %v127_v1 = vld [vmem:[%s170_s1] sm:$0xff]   ;;  %121 = vmatprep.mubr.msk.bf16.mxu0 %vm131_vm0, %v130_v0  ;;  %v128_v2 = vld [vmem:[%s170_s1 + $0x8] sm:$0xff]  }
   0x2   :  { %118 = vmatpush3.bf16.msra.mxu0 %v127_v1  ;;  %v129_v3 = vld [vmem:[%s171_s0] sm:$0xff]  }
   0x3   :  { %119 = vmatprep.subr.bf16.mxu0 %v130_v0  ;;  %v105_v4 = vld [vmem:[%s172_s2] ss:$0 sm:$0xff] }
   0x6   :  { %120 = vmatpush3.bf16.msra.mxu0 %v128_v2 }
   0x9   :  { %122 = vmatmul.mubr.msk.bf16.vlgmr.msra.gmra.mrb[0].mxu0 %vm45_vm1, %v129_v3 }
  0xdc   :  { %v83_v5 = vpop.f32.mrb[0].mxu0 }
  0xdd   :  { %v84_v6 = vadd.f32 %v105_v4, %v83_v5  ;;  %v123_v7 = vpop.f32.mrb[1].mxu0 }
  0xde   :  { %v86_v8 = vpop.f32.mrb[2].mxu0 }
  0xdf   :  { %v112_v9 = vpack.c.bf16 %v84_v6, %v84_v6  ;;  %v87_v10 = vadd.f32 %v105_v4, %v86_v8  ;;  %v124_v11 = vpop.f32.mrb[3].mxu0 }
  0xe1   :  { %99 = vst.msk [vmem:[%s173_s3] sm:$0xf] %vm98_vm2, %v112_v9  ;;  %v113_v12 = vpack.c.bf16 %v87_v10, %v87_v10 }
  0xe3   :  { %100 = vst.msk [vmem:[%s173_s3 + $0x4] sm:$0xf] %vm98_vm2, %v113_v12 }

// kernel: causal_self_attention.4
= control target key start
LH: loop header
LB: loop body
LE: loop exit
PB: predicated region body
PF: predicated region fallthrough
CT: control target
= control target key end

     0   :  { %s836_s22 = smov 0   ;;  %s838_s23 = smov 0   ;;  %s920_s0 = inlined_call_operand.<no memory space> [shape: s32[1], index: 0, kind: input, shape index: {}, may-alias: {0,1}]   ;;  %s921_s1 = inlined_call_operand.<no memory space> [shape: s32[1], index: 1, kind: input, shape index: {}, may-alias: {0,1}]   ;;  %s922_s2 = inlined_call_operand.vmem [shape: bf16[2,4,8,8], index: 2, kind: input, shape index: {}]   ;;  %s923_s3 = inlined_call_operand.vmem [shape: bf16[2,4,8,8], index: 3, kind: input, shape index: {}]   ;;  %s924_s4 = inlined_call_operand.vmem [shape: bf16[2,4,8,8], index: 4, kind: input, shape index: {}]   ;;  %s925_s5 = inlined_call_operand.vmem [shape: bf16[2,4,8,8], index: 5, kind: output, shape index: {}]  }
   0x1   :  { %10 = sst [smem:[#allocation6]] %s920_s0  ;;  %s840_s24 = smov 0  }
   0x2   :  { %11 = sst [smem:[#allocation7]] %s921_s1  ;;  %s842_s25 = smov 0  }
   0x3   :  { %s844_s26 = smov 0  }
   0x4 LB: > { %s32_s0 = sadd.s32 1, %s784_s24  ;;  %s36_s1 = sadd.s32 1, %s788_s25  ;;  %s792_s26 = sphi %s844_s26, %s17_s26   ;;  %s788_s25 = sphi %s842_s25, %s929_s25   ;;  %s784_s24 = sphi %s840_s24, %s928_s24   ;;  %s780_s23 = sphi %s838_s23, %s927_s23   ;;  %s776_s22 = sphi %s836_s22, %s926_s22  }
   0x5   : > { %p34_p0 = scmp.ge.s32.totalorder %s32_s0, 4  ;;  %p666_p1 = scmp.ge.s32.totalorder %s792_s26, 1 }
   0x6   : > { %p228_p2 = scmp.lt.s32.totalorder %s792_s26, 9 }
   0x7   : > { %s931_s0 = smov (%p34_p0, %s32_s0), 0  ;;  %s933_s1 = smov (!%p34_p0, %s36_s1), %s788_s25 }
   0x8   : > { %p229_p3 = pnand %p666_p1, %p228_p2  ;;  %p38_p4 = scmp.ge.s32.totalorder %s933_s1, 2 }
   0x9   : > { %s866_s27 = sld [smem:[#allocation6]] (!%p229_p3)  ;;  %p291_p5 = scmp.lt.s32.totalorder (!%p229_p3), %s780_s23, 1 }
   0xa   : > { %s935_s1 = smov (%p38_p4, %s933_s1), 0  ;;  %232 = sbr.rel (%p229_p3) target bundleno = 840 (0x348), region = 32 }
   0xb   : > { %p293_p6 = scmp.lt.s32.totalorder (!%p229_p3), %s776_s22, 3  ;;  %s868_s28 = sld [smem:[#allocation7]] (!%p229_p3) }
   0xf   : > { %p295_p7 = scmp.lt.s32.totalorder (!%p229_p3), %s866_s27, 0 }
  0x11   : > { %s937_s23 = smov (!%p291_p5, %s780_s23), 1  ;;  %s939_s22 = smov (!%p293_p6, %s776_s22), 3 }
  0x12   : > { %s667_s29 = sshll.u32 %s937_s23, 2  ;;  %p308_p8 = scmp.lt.s32.totalorder %s868_s28, 0 }
  0x13   : > { %s296_s30 = scalar_select %p295_p7, %s866_s27, 0 }
  0x14   : > { %s309_s6 = scalar_select %p308_p8, %s868_s28, 0 }
  0x15   : > { %s297_s7 = sadd.s32 %s296_s30, %s939_s22  ;;  %p675_p9 = scmp.ne.s32.totalorder %s868_s28, 0 }
  0x16   : > { %s299_s8 = sadd.s32 %s667_s29, %s297_s7  ;;  %s310_s9 = sadd.s32 %s309_s6, %s939_s22  ;;  %vm349_vm0 = vcmask (!%p675_p9), 7168   ;;  %vm352_vm1 = vcmask (!%p675_p9), 64512   ;;  %v794_v0 = vmov (!%p675_p9), -1e+30   ;;  %v795_v1 = vmov (!%p675_p9), 0.0  }
  0x17   : > { %s668_s10 = sshll.u32 %s299_s8, 2  ;;  %s312_s11 = sadd.s32 %s667_s29, %s310_s9  ;;  %350 = vst.msk [vmem:[#allocation2] sm:$0xff] (!%p675_p9), %vm349_vm0, %v794_v0  ;;  %351 = vst.msk [vmem:[#allocation3] sm:$0xff] (!%p675_p9), %vm349_vm0, %v795_v1 }
  0x18   : > { %s301_s14 = scalar_lea.vmem %s922_s2, %s668_s10  ;;  %s670_s15 = sshll.u32 %s312_s11, 2  ;;  %353 = vst.msk [vmem:[#allocation4] sm:$0xff] (!%p675_p9), %vm352_vm1, %v795_v1 }
  0x19   : > { %s314_s18 = scalar_lea.vmem %s923_s3, %s670_s15  ;;  %s883_s21 = scalar_lea.vmem %s924_s4, %s670_s15 }
  0x1a   : > { %s888_s22 = scalar_lea.vmem %s925_s5, %s668_s10  ;;  %348 = sbr.rel (%p675_p9) target bundleno = 33 (0x21), region = 36 }
  0x21 PF: > { %v355_v2 = vld [vmem:[%s314_s18] sm:$0xf]  ;;  %vm356_vm2 = vcmask 64512   ;;  %v796_v3 = vmov 0.0   ;;  %vm797_vm3 = vmmov 0   ;;  %v403_v6 = vlaneseq  ;;  %s677_s29 = sshll.u32 %s868_s28, 3  ;;  %p680_p10 = scmp.ne.s32.totalorder %s868_s28, %s866_s27 }
  0x22   : > { %687 = vmatprep.subr.bf16.mxu0 %v796_v3  ;;  %v361_v4 = vsel %vm356_vm2, %v355_v2, 0  ;;  %689 = vmatprep.mubr.msk.bf16.mxu0 %vm797_vm3, %v796_v3  ;;  %v354_v5 = vld [vmem:[%s301_s14] sm:$0xf]  ;;  %s678_s6 = sshll.u32 %s866_s27, 3  ;;  %v408_v9 = vstv %s677_s29  ;;  %v798_v19 = vmov 0   ;;  %vm437_vm5 = vcmask 7168  }
  0x23   : > { %688 = vmatpush3.bf16.xpose.msra.mxu0 %v361_v4  ;;  %693 = vmatprep.subr.bf16.mxu1 %v796_v3  ;;  %v404_v7 = vshrl.u32 %v403_v6, 7  ;;  %v406_v8 = vand.u32 127, %v403_v6  ;;  %v411_v10 = vstv %s678_s6  ;;  %v415_v20 = vld [vmem:[#allocation2] sm:$0xff]  ;;  %vm451_vm6 = vcmask 1043456   ;;  %v431_v34 = vld [vmem:[#allocation3] sm:$0xff]  ;;  %v439_v38 = vld [vmem:[#allocation4] sm:$0xff] }
  0x24   : > { %695 = vmatprep.mubr.msk.bf16.mxu1 %vm797_vm3, %v796_v3  ;;  %745 = vset.pattern.permute.xlu0 %v798_v19  ;;  %v447_v24 = vld [vmem:[%s883_s21] sm:$0xf]  ;;  %v799_v47 = vmov (!%p680_p10), 0   ;;  %vm512_vm7 = vcmask (!%p680_p10), 60416  }
  0x25   : > { %v409_v11 = vadd.s32 %v408_v9, %v406_v8  ;;  %v412_v12 = vadd.s32 %v411_v10, %v404_v7  ;;  %746 = vset.pattern.permute.xlu1 %v798_v19  ;;  %v453_v25 = vsel %vm451_vm6, %v447_v24, 0 }
  0x26   : > { %694 = vmatpush3.bf16.msra.mxu1 %v453_v25 }
  0x27   : > { %vm413_vm4 = vcmp.le.s32.totalorder %v409_v11, %v412_v12 }
  0x2a   : > { %690 = vmatmul.mubr.msk.bf16.vlgmr.msra.gmra.mrb[0].mxu0 %vm356_vm2, %v354_v5 }
  0xfd   : > { %v397_v13 = vpop.f32.mrb[0].mxu0 }
  0xfe   : > { %v414_v14 = vsel %vm413_vm4, %v397_v13, -1e+30  ;;  %v691_v15 = vpop.f32.mrb[1].mxu0 }
  0xff   : > { %v400_v16 = vpop.f32.mrb[2].mxu0  ;;  %v416_v17 = vsel %vm356_vm2, %v414_v14, -inf }
 0x100   : > { %417 = vmax.xlane.f32.xlu0 %v416_v17  ;;  %v692_v18 = vpop.f32.mrb[3].mxu0 }
 0x18d   : > { %v418_v21 = vpop.xlane.xlu0 %417 }
 0x18e   : > { %v419_v22 = vmax.f32 %v415_v20, %v418_v21 }
 0x190   : > { %v420_v23 = vsub.f32 %v415_v20, %v419_v22  ;;  %497 = vst.msk [vmem:[#allocation2] sm:$0xff] %vm437_vm5, %v419_v22  ;;  %425 = vperm.xlu0 %745, %v419_v22  }
 0x192   : > { %v421_v32 = vmul.f32 1.442695, %v420_v23 }
 0x194   : > { %751 = vset.pattern.permute.xlu0 (!%p680_p10), %v799_v47 }
 0x20f   : > { %v426_v26 = vpop.permute.xlu0 %425 }
 0x210   : > { %v428_v27 = vsub.f32 %v414_v14, %v426_v26 }
 0x212   : > { %v429_v28 = vmul.f32 1.442695, %v428_v27 }
 0x214   : > { %747 = vpow2.f32 %v429_v28 }
 0x215   : > { %749 = vpow2.f32 %v421_v32 }
 0x21e   : > { %v748_v29 = vpop.eup %747 }
 0x21f   : > { %v433_v30 = vsel %vm356_vm2, %v748_v29, 0.0  ;;  %v446_v31 = vpack.c.bf16 %v748_v29, %v748_v29  ;;  %v750_v33 = vpop.eup %749 }
 0x220   : > { %434 = vadd.xlane.f32.xlu1 %v433_v30  ;;  %v432_v35 = vmul.f32 %v750_v33, %v431_v34 }
 0x221   : > { %696 = vmatmul.mubr.msk.bf16.vlgmr.msra.gmra.mrb[0].mxu1 %vm356_vm2, %v446_v31 }
 0x231   : > { %442 = vperm.xlu1 %746, %v750_v33  }
 0x2ad   : > { %v435_v36 = vpop.xlane.xlu1 %434 }
 0x2ae   : > { %v436_v37 = vadd.f32 %v435_v36, %v432_v35 }
 0x2b0   : > { %438 = vst.msk [vmem:[#allocation3] sm:$0xff] %vm437_vm5, %v436_v37 }
 0x2b1   : > { %v443_v39 = vpop.permute.xlu1 %442 }
 0x2b2   : > { %v445_v40 = vmul.f32 %v443_v39, %v439_v38 }
 0x2b7   : > { %v502_v46 = vld [vmem:[#allocation3] sm:$0xff] (!%p680_p10) }
 0x2b8   : > { %752 = vrcp.f32 (!%p680_p10), %v502_v46 }
 0x2c2   : > { %v753_v48 = vpop.eup (!%p680_p10), %752 }
 0x2c3   : > { %507 = vperm.xlu0 (!%p680_p10), %751, %v753_v48  }
 0x2f1   : > { %501 = sbr.rel (%p680_p10) target bundleno = 840 (0x348), region = 40 }
 0x2f4   : > { %v489_v41 = vpop.f32.mrb[0].mxu1 }
 0x2f5   : > { %v495_v42 = vadd.f32 %v489_v41, %v445_v40  ;;  %v697_v43 = vpop.f32.mrb[1].mxu1 }
 0x2f6   : > { %v492_v44 = vpop.f32.mrb[2].mxu1 }
 0x2f7   : > { %496 = vst.msk [vmem:[#allocation4] sm:$0xff] %vm356_vm2, %v495_v42  ;;  %v698_v45 = vpop.f32.mrb[3].mxu1 }
 0x2fe   : > { %v504_v49 = vld [vmem:[#allocation4] sm:$0xff] }
 0x342   : > { %v508_v50 = vpop.permute.xlu0 %507 }
 0x343   : > { %v510_v51 = vmul.f32 %v508_v50, %v504_v49 }
 0x345   : > { %v511_v52 = vpack.c.bf16 %v510_v51, %v510_v51 }
 0x347   : > { %513 = vst.msk [vmem:[%s888_s22] sm:$0xf] %vm512_vm7, %v511_v52 }
 0x348 PF: > { %s17_s26 = sadd.s32 1, %s792_s26   ;;  %s926_s22 = smov %s784_s24 }
 0x349   : > { %p14_p11 = scmp.ge.s32.totalorder %s17_s26, 10   ;;  %s927_s23 = smov %s788_s25 }
 0x34a   : > { %s928_s24 = smov %s931_s0  ;;  %s929_s25 = smov %s935_s1 }
 0x34b   :  { %16 = sbr.rel (!%p14_p11) target bundleno = 4 (0x4), region = 76 }

// kernel: causal_self_attention.5
= control target key start
LH: loop header
LB: loop body
LE: loop exit
PB: predicated region body
PF: predicated region fallthrough
CT: control target
= control target key end

     0   :  { %8 = vsyncpa [#allocation3], 0  ;;  %s847_s0 = inlined_call_operand.vmem [shape: bf16[2,4,8,8], index: 0, kind: input, shape index: {}]   ;;  %s848_s1 = inlined_call_operand.vmem [shape: bf16[4,8,32], index: 1, kind: input, shape index: {}]   ;;  %s849_s2 = inlined_call_operand.vmem [shape: f32[1,32], index: 2, kind: input, shape index: {}]   ;;  %s850_s3 = inlined_call_operand.hbm [shape: f32[2,8,32], index: 3, kind: output, shape index: {}]  }
   0x1   :  { %10 = vsyncpa [#allocation3 + $0x1], 0  ;;  %s712_s12 = smov 0   ;;  %s714_s13 = smov 0  }
   0x2   :  { %s716_s14 = smov 0   ;;  %s718_s15 = smov 0  }
   0x3   :  { %s720_s16 = smov 0   ;;  %s722_s17 = smov 0  }
   0x4 LB: > { %s496_s18 = sadd.s32 4294967295, %s687_s17   ;;  %s497_s19 = sadd.s32 4294967294, %s687_s17   ;;  %s687_s17 = sphi %s722_s17, %s16_s17   ;;  %s683_s16 = sphi %s720_s16, %s857_s16   ;;  %s679_s15 = sphi %s718_s15, %s856_s15   ;;  %s675_s14 = sphi %s716_s14, %s855_s14   ;;  %s671_s13 = sphi %s714_s13, %s854_s13   ;;  %s667_s12 = sphi %s712_s12, %s853_s12  }
   0x5   : > { %s28_s20 = sadd.s32 1, %s683_s16  ;;  %s107_s21 = sadd.s32 1, %s675_s14 }
   0x6   : > { %p30_p0 = scmp.ge.s32.totalorder %s28_s20, 2  ;;  %p117_p1 = scmp.ne.s32.totalorder %s675_s14, %s671_s13 }
   0x7   : > { %p118_p2 = scmp.eq.s32.totalorder %s496_s18, 1  ;;  %p123_p3 = scmp.ne.s32.totalorder %s671_s13, %s667_s12 }
   0x8   : > { %s859_s20 = smov (%p30_p0, %s28_s20), 0  ;;  %p124_p5 = scmp.eq.s32.totalorder %s497_s19, 1 }
   0x9   : > { %p752_p4 = por %p118_p2, %p117_p1  ;;  %s102_s23 = ssub.s32 %s683_s16, %s859_s20 }
   0xa   : > { %p500_p6 = scmp.ge.s32.totalorder %s687_s17, 1  ;;  %p105_p7 = scmp.eq.s32.totalorder %s102_s23, 0 }
   0xb   : > { %p759_p8 = por %p124_p5, %p123_p3  ;;  %p159_p9 = scmp.lt.s32.totalorder %s687_s17, 3 }
   0xc   : > { %s765_s25 = scalar_select %p105_p7, %s675_s14, %s107_s21  }
   0xd   : > { %p160_p10 = pnand %p500_p6, %p159_p9 }
   0xe   : > { %v505_v0 = vld [vmem:[%s848_s1 + $0x4] sm:$0xf] (!%p160_p10)  ;;  %vm205_vm0 = vcmask (!%p160_p10), 1043456   ;;  %v196_v1 = vld [vmem:[%s848_s1] sm:$0xf] (!%p160_p10)  ;;  %v689_v2 = vmov (!%p160_p10), 0.0  }
   0xf   : > { %163 = sbr.rel (%p160_p10) target bundleno = 267 (0x10b), region = 32  ;;  %528 = vmatprep.subr.bf16.mxu0 (!%p160_p10), %v689_v2  ;;  %v207_v3 = vsel (!%p160_p10), %vm205_vm0, %v505_v0, 0  ;;  %534 = vmatprep.subr.bf16.mxu1 (!%p160_p10), %v689_v2  ;;  %v253_v4 = vsel (!%p160_p10), %vm205_vm0, %v196_v1, 0  ;;  %p186_p11 = scmp.lt.s32.totalorder (!%p160_p10), %s679_s15, 1  ;;  %vm690_vm1 = vmmov (!%p160_p10), 0   ;;  %vm201_vm2 = vcmask (!%p160_p10), 64512  }
  0x10   : > { %529 = vmatpush3.bf16.msra.mxu0 (!%p160_p10), %v207_v3  ;;  %535 = vmatpush3.bf16.msra.mxu1 (!%p160_p10), %v253_v4  ;;  %v509_v5 = vld [vmem:[%s848_s1 + $0x8] sm:$0xf] (!%p160_p10)  ;;  %v512_v6 = vld [vmem:[%s848_s1 + $0xc] sm:$0xf] (!%p160_p10)  ;;  %s183_s18 = sand.u32 (!%p160_p10), 1, %s671_s13   ;;  %s516_s26 = sshll.u32 (!%p160_p10), %s679_s15, 7 }
  0x11   : > { %530 = vmatprep.mubr.msk.bf16.mxu0 (!%p160_p10), %vm690_vm1, %v689_v2  ;;  %536 = vmatprep.mubr.msk.bf16.mxu1 (!%p160_p10), %vm690_vm1, %v689_v2  ;;  %v303_v7 = vsel (!%p160_p10), %vm205_vm0, %v509_v5, 0  ;;  %v354_v8 = vsel (!%p160_p10), %vm205_vm0, %v512_v6, 0  ;;  %s501_s19 = sshll.u32 (!%p160_p10), %s183_s18, 3  ;;  %v514_v27 = vld [vmem:[%s849_s2] ss:$0 sm:$0xff] (!%p160_p10)  ;;  %vm405_vm3 = vcmask (!%p160_p10), 261120   ;;  %s800_s4 = scalar_lea.hbm (!%p160_p10), %s850_s3, %s516_s26 }
  0x12   : > { %540 = vmatprep.subr.bf16.mxu0 (!%p160_p10), %v689_v2  ;;  %546 = vmatprep.subr.bf16.mxu1 (!%p160_p10), %v689_v2  ;;  %s185_s27 = scalar_lea.vmem (!%p160_p10), [#allocation2], %s501_s19  ;;  %s408_s5 = scalar_lea.sflag (!%p160_p10), [#allocation3], %s183_s18 }
  0x13   : > { %s422_s28 = sshll.u32 (!%p160_p10), %s185_s27, 4  ;;  %s691_s6 = smov (!%p160_p10), [#allocation2]   ;;  %s802_s28 = int_to_ptr.vmem [resolvable:$true] %s422_s28 }
  0x14   : > { %s613_s7 = sshll.u32 (!%p160_p10), %s691_s6, 4  ;;  %s614_s7 = int_to_ptr.vmem [resolvable:$false] %s613_s7 }
  0x15   : > { %p616_p1 = scmp.lt.s32.totalorder (!%p160_p10), %s802_s28, %s614_s7 }
  0x16   : > { %s187_s30 = scalar_select %p186_p11, %s679_s15, 1 }
  0x17   : > { %s609_s15 = scalar_lea.vmem %s802_s28, 128 }
  0x18   : > { %s519_s8 = sshll.u32 %s187_s30, 4  ;;  %p610_p12 = scmp.ne.s32.totalorder %s802_s28, %s609_s15 }
  0x19   : > { %s193_s11 = scalar_lea.vmem %s847_s0, %s519_s8  ;;  %s615_s8 = scalar_lea.vmem %s614_s7, 256 }
  0x1a   : > { %v504_v9 = vld [vmem:[%s193_s11 + $0x4] sm:$0xf]  ;;  %v195_v10 = vld [vmem:[%s193_s11] sm:$0xf]  ;;  %v508_v11 = vld [vmem:[%s193_s11 + $0x8] sm:$0xf]  ;;  %p611_p13 = pnand %p610_p12, %p752_p4  ;;  %p617_p2 = scmp.lt.s32.totalorder %s615_s8, %s609_s15 }
  0x1b   : > { %531 = vmatmul.mubr.msk.bf16.vlgmr.msra.gmra.mrb[0].mxu0 %vm201_vm2, %v504_v9  ;;  %537 = vmatmul.mubr.msk.bf16.vlgmr.msra.gmra.mrb[0].mxu1 %vm201_vm2, %v195_v10  ;;  %v511_v12 = vld [vmem:[%s193_s11 + $0xc] sm:$0xf] }
  0x1c   : > { %541 = vmatpush3.bf16.msra.mxu0 %v303_v7  ;;  %547 = vmatpush3.bf16.msra.mxu1 %v354_v8  ;;  %p612_p0 = pneg %p611_p13  ;;  %p618_p3 = por %p617_p2, %p616_p1 }
  0x1d   : > { %542 = vmatprep.mubr.msk.bf16.mxu0 %vm690_vm1, %v689_v2  ;;  %548 = vmatprep.mubr.msk.bf16.mxu1 %vm690_vm1, %v689_v2 }
  0x1e   : > { %p619_p5 = pnand %p618_p3, %p612_p0 }
  0x23   : > { %543 = vmatmul.mubr.msk.bf16.vlgmr.msra.gmra.mrb[4].mxu0 %vm201_vm2, %v508_v11  ;;  %549 = vmatmul.mubr.msk.bf16.vlgmr.msra.gmra.mrb[4].mxu1 %vm201_vm2, %v511_v12 }
  0xee   : > { %v243_v13 = vpop.f32.mrb[0].mxu0  ;;  %v289_v14 = vpop.f32.mrb[0].mxu1 }
  0xef   : > { %v290_v15 = vadd.f32 %v289_v14, %v243_v13  ;;  %v532_v16 = vpop.f32.mrb[1].mxu0  ;;  %v538_v17 = vpop.f32.mrb[1].mxu1 }
  0xf0   : > { %v246_v18 = vpop.f32.mrb[2].mxu0  ;;  %v292_v19 = vpop.f32.mrb[2].mxu1 }
  0xf1   : > { %v533_v20 = vpop.f32.mrb[3].mxu0  ;;  %v539_v21 = vpop.f32.mrb[3].mxu1 }
  0xf6   : > { %v339_v22 = vpop.f32.mrb[4].mxu0  ;;  %v390_v23 = vpop.f32.mrb[4].mxu1 }
  0xf7   : > { %v345_v24 = vadd.f32 %v339_v22, %v290_v15  ;;  %v544_v25 = vpop.f32.mrb[5].mxu0  ;;  %v550_v26 = vpop.f32.mrb[5].mxu1 }
  0xf8   : > { %v342_v28 = vpop.f32.mrb[6].mxu0  ;;  %v393_v29 = vpop.f32.mrb[6].mxu1 }
  0xf9   : > { %v396_v30 = vadd.f32 %v390_v23, %v345_v24  ;;  %v545_v31 = vpop.f32.mrb[7].mxu0  ;;  %v551_v32 = vpop.f32.mrb[7].mxu1 }
  0xfb   : > { %v404_v33 = vadd.f32 %v514_v27, %v396_v30 }
  0xfd   : > { %406 = vst.msk [vmem:[%s185_s27] sm:$0xff] %vm405_vm3, %v404_v33 }
  0xfe   : > { %622 = shalt.err (!%p619_p5)
}
  0xff   : > { %s623_s9 = scalar_lea.hbm %s800_s4, 128  ;;  %s627_s18 = scalar_lea.hbm %s850_s3, 256 }
 0x100   : > { %p624_p6 = scmp.ne.s32.totalorder %s800_s4, %s623_s9  ;;  %p628_p10 = scmp.lt.u32.totalorder %s800_s4, %s850_s3 }
 0x101   : > { %p629_p11 = scmp.lt.u32.totalorder %s627_s18, %s623_s9  ;;  %p631_p13 = scmp.lt.u32.totalorder %s623_s9, %s800_s4 }
 0x102   : > { %p625_p7 = pnand %p624_p6, %p752_p4 }
 0x103   : > { %p630_p12 = por %p629_p11, %p628_p10 }
 0x104   : > { %p626_p9 = pneg %p625_p7 }
 0x105   : > { %p632_p0 = por %p631_p13, %p630_p12 }
 0x107   : > { %p633_p1 = pnand %p632_p0, %p626_p9 }
 0x109   : > { %636 = shalt.err (!%p633_p1)
}
 0x10a   : > { %552 = dma.vmem_to_hbm [thread:$0]  (%p752_p4), %s802_s28, 128, %s800_s4, %s408_s5  }
 0x10b PF: > { %p558_p2 = scmp.ge.s32.totalorder %s687_s17, 2  ;;  %s434_s23 = sand.u32 1, %s667_s12  }
 0x10c   : > { %s435_s26 = scalar_lea.sflag [#allocation3], %s434_s23 }
 0x10d   : > { %p555_p3 = pnand %p558_p2, %p759_p8 }
 0x10f   : > { %662 = dma.done.wait (!%p555_p3), %s435_s26, 128  }
 0x110   : > { %664 = vsyncadd (!%p555_p3), %s435_s26, 4294967168  ;;  %s16_s17 = sadd.s32 1, %s687_s17   ;;  %s853_s12 = smov %s671_s13 }
 0x111   : > { %p13_p5 = scmp.ge.s32.totalorder %s16_s17, 4   ;;  %s854_s13 = smov %s675_s14 }
 0x112   : > { %s855_s14 = smov %s765_s25  ;;  %s856_s15 = smov %s683_s16 }
 0x113   : > { %s857_s16 = smov %s859_s20  ;;  %15 = sbr.rel (!%p13_p5) target bundleno = 4 (0x4), region = 73 }
 0x11a   :  { %440 = vsyncpa [#allocation3], 1 }
 0x11b   :  { %442 = vsyncpa [#allocation3 + $0x1], 1 }

</bundles_post_ra>
